<compile_context>
chip_gen: v7x
topology: tpu7x:2x2x1
jax: 0.10.0
libtpu: 0.0.40
codegen_flags: <defaults>
</compile_context>

<pallas_src>
import functools

import jax
import jax.numpy as jnp
from jax import lax
from jax.experimental import pallas as pl
from jax.experimental.pallas import tpu as pltpu

INPUT_DIM = 1
HIDDEN_DIM = 32
MID_DIM = 16
OUTPUT_DIM = 1


def mlp_kernel(x_ref, w1_ref, b1_ref, w2_ref, b2_ref, w3_ref, b3_ref, o_ref,
               *, chunk):
    # Weights / biases are tiny and VMEM-resident; load once per grid step.
    w1 = w1_ref[...]          # [32, 1]
    b1 = b1_ref[...]          # [32, 1]
    w2 = w2_ref[...]          # [16, 32]
    b2 = b2_ref[...]          # [16, 1]
    w3 = w3_ref[...]          # [1, 16]
    b3 = b3_ref[...]          # [1, 1]

    n_chunks = x_ref.shape[1] // chunk   # static (block shape is static)

    def body(c, carry):
        start = pl.multiple_of(c * chunk, chunk)
        x = x_ref[:, pl.ds(start, chunk)]                       # [1, chunk]

        # Layer 1: Linear(1, 32), K=1 -> VPU broadcast outer product.
        h1 = jnp.maximum(w1 * x + b1, 0.0)                      # [32, chunk]

        # Layer 2: Linear(32, 16) -> MXU matmul, N lane-dense.
        h2 = jnp.dot(w2, h1, preferred_element_type=jnp.float32)
        h2 = jnp.maximum(h2 + b2, 0.0)                          # [16, chunk]

        # Layer 3: Linear(16, 1) -> MXU matmul (rides the mostly idle MXU slot).
        out = jnp.dot(w3, h2, preferred_element_type=jnp.float32) + b3  # [1, chunk]

        o_ref[:, pl.ds(start, chunk)] = out.astype(o_ref.dtype)
        return carry

    lax.fori_loop(0, n_chunks, body, 0, unroll=True)


def neural_network_forward(x, params, *, b_tile=4096, chunk=512):
    """x: [B, 1] float32 (PyTorch layout).  Returns [B, 1] float32.

    params (PyTorch-style, except w3 stored as [1, 16] so layer 3 is a
    lane-dense MXU matmul):
      w1: [32, 1], b1: [32, 1], w2: [16, 32], b2: [16, 1], w3: [1, 16], b3: [1, 1]
    """
    B = x.shape[0]
    assert x.shape == (B, INPUT_DIM)
    chunk = min(chunk, b_tile)
    assert b_tile % 128 == 0 and chunk % 128 == 0 and b_tile % chunk == 0

    # Pure relabel [B,1] -> [1,B]; no transpose / copy emitted.
    xt = x.reshape(1, B)

    n_tiles = pl.cdiv(B, b_tile)   # partial edge block handled by Pallas

    w1, b1, w2, b2, w3, b3 = (
        params["w1"], params["b1"], params["w2"],
        params["b2"], params["w3"], params["b3"],
    )

    # Weights/biases: full-array blocks, constant index_map -> VMEM-resident.
    resident = lambda a: pl.BlockSpec(a.shape, lambda i: (0,) * a.ndim)

    out_t = pl.pallas_call(
        functools.partial(mlp_kernel, chunk=chunk),
        out_shape=jax.ShapeDtypeStruct((1, B), jnp.float32),
        grid=(n_tiles,),
        in_specs=[
            pl.BlockSpec((1, b_tile), lambda i: (0, i)),   # x tile (lane-dense)
            resident(w1), resident(b1),
            resident(w2), resident(b2),
            resident(w3), resident(b3),
        ],
        out_specs=pl.BlockSpec((1, b_tile), lambda i: (0, i)),
        compiler_params=pltpu.CompilerParams(
            dimension_semantics=("parallel",),   # v7x: shard batch tiles over 2 TCs
        ),
    )(xt, w1, b1, w2, b2, w3, b3)

    # Back to PyTorch layout [B, 1] (pure relabel).
    return out_t.reshape(B, OUTPUT_DIM)


def init_params(key):
    """Deterministic synthetic init matching nn.Linear fan-in bounds."""
    k1, k2, k3, k4, k5, k6 = jax.random.split(key, 6)

    def uniform(k, shape, fan_in):
        bound = 1.0 / jnp.sqrt(jnp.float32(fan_in))
        return jax.random.uniform(k, shape, jnp.float32, -bound, bound)

    return {
        # layer_1: Linear(1, 32)  -> W: [32, 1], b: [32, 1]
        "w1": uniform(k1, (HIDDEN_DIM, INPUT_DIM), INPUT_DIM),
        "b1": uniform(k2, (HIDDEN_DIM, 1), INPUT_DIM),
        # layer_2: Linear(32, 16) -> W: [16, 32], b: [16, 1]
        "w2": uniform(k3, (MID_DIM, HIDDEN_DIM), HIDDEN_DIM),
        "b2": uniform(k4, (MID_DIM, 1), HIDDEN_DIM),
        # layer_3: Linear(16, 1)  -> W: [1, 16], b: [1, 1]
        "w3": uniform(k5, (OUTPUT_DIM, MID_DIM), MID_DIM),
        "b3": uniform(k6, (OUTPUT_DIM, 1), MID_DIM),
    }


def reference_forward(x, p):
    # x: [B, 1] -> [B, 1]
    h1 = jnp.maximum(x @ p["w1"].T + p["b1"].T, 0.0)   # [B, 32]
    h2 = jnp.maximum(h1 @ p["w2"].T + p["b2"].T, 0.0)  # [B, 16]
    return h2 @ p["w3"].T + p["b3"].T                  # [B, 1]


if __name__ == "__main__":
    key = jax.random.PRNGKey(0)
    kx, kp = jax.random.split(key)

    # Small test: B intentionally not a multiple of the tile to exercise the
    # partial edge block (masked writeback, no wrapper-side padding).
    B = 300
    x = jax.random.normal(kx, (B, INPUT_DIM), jnp.float32)
    params = init_params(kp)

    out = neural_network_forward(x, params, b_tile=256, chunk=128)  # grid of 2 tiles
    out = jax.block_until_ready(out)

    ref = reference_forward(x, params)
    assert out.shape == (B, OUTPUT_DIM), out.shape
    assert jnp.allclose(out, ref, atol=1e-5, rtol=1e-5), (out, ref)

    print("KERNEL_OK")
</pallas_src>

<mosaic_0001>
module attributes {stable_mosaic.version = 11 : i64} {
  func.func @mlp_kernel(%arg0: i32, %arg1: memref<1x256xf32, #tpu.memory_space<vmem>>, %arg2: memref<32x1xf32, #tpu.memory_space<vmem>>, %arg3: memref<32x1xf32, #tpu.memory_space<vmem>>, %arg4: memref<16x32xf32, #tpu.memory_space<vmem>>, %arg5: memref<16x1xf32, #tpu.memory_space<vmem>>, %arg6: memref<1x16xf32, #tpu.memory_space<vmem>>, %arg7: memref<1x1xf32, #tpu.memory_space<vmem>>, %arg8: memref<1x256xf32, #tpu.memory_space<vmem>>) attributes {dimension_semantics = [#tpu.dimension_semantics<parallel>], iteration_bounds = array<i64: 2>, scalar_prefetch = 0 : i64, scratch_operands = 0 : i64, tpu.core_type = #tpu.core_type<tc>, window_params = [{transform_indices = @transform_0, window_bounds = array<i64: 1, 256>}, {pipeline_mode = #tpu.pipeline_mode<synchronous>, transform_indices = @transform_1, window_bounds = array<i64: 32, 1>}, {pipeline_mode = #tpu.pipeline_mode<synchronous>, transform_indices = @transform_2, window_bounds = array<i64: 32, 1>}, {pipeline_mode = #tpu.pipeline_mode<synchronous>, transform_indices = @transform_3, window_bounds = array<i64: 16, 32>}, {pipeline_mode = #tpu.pipeline_mode<synchronous>, transform_indices = @transform_4, window_bounds = array<i64: 16, 1>}, {pipeline_mode = #tpu.pipeline_mode<synchronous>, transform_indices = @transform_5, window_bounds = array<i64: 1, 16>}, {pipeline_mode = #tpu.pipeline_mode<synchronous>, transform_indices = @transform_6, window_bounds = array<i64: 1, 1>}, {transform_indices = @transform_7, window_bounds = array<i64: 1, 256>}]} {
    %c0 = arith.constant 0 : index
    %c0_0 = arith.constant 0 : index
    %0 = vector.load %arg2[%c0, %c0_0] : memref<32x1xf32, #tpu.memory_space<vmem>>, vector<32x1xf32>
    %c0_1 = arith.constant 0 : index
    %c0_2 = arith.constant 0 : index
    %1 = vector.load %arg3[%c0_1, %c0_2] : memref<32x1xf32, #tpu.memory_space<vmem>>, vector<32x1xf32>
    %c0_3 = arith.constant 0 : index
    %c0_4 = arith.constant 0 : index
    %2 = vector.load %arg4[%c0_3, %c0_4] : memref<16x32xf32, #tpu.memory_space<vmem>>, vector<16x32xf32>
    %c0_5 = arith.constant 0 : index
    %c0_6 = arith.constant 0 : index
    %3 = vector.load %arg5[%c0_5, %c0_6] : memref<16x1xf32, #tpu.memory_space<vmem>>, vector<16x1xf32>
    %c0_7 = arith.constant 0 : index
    %c0_8 = arith.constant 0 : index
    %4 = vector.load %arg6[%c0_7, %c0_8] : memref<1x16xf32, #tpu.memory_space<vmem>>, vector<1x16xf32>
    %c0_9 = arith.constant 0 : index
    %c0_10 = arith.constant 0 : index
    %5 = vector.load %arg7[%c0_9, %c0_10] : memref<1x1xf32, #tpu.memory_space<vmem>>, vector<1x1xf32>
    %c0_i32 = arith.constant 0 : i32
    %c128_i32 = arith.constant 128 : i32
    %6 = arith.muli %c0_i32, %c128_i32 : i32
    %7 = tpu.assume_multiple %6, 128 : i32
    %c0_11 = arith.constant 0 : index
    %8 = arith.index_cast %7 : i32 to index
    %9 = vector.load %arg1[%c0_11, %8] : memref<1x256xf32, #tpu.memory_space<vmem>>, vector<1x128xf32>
    %10 = vector.broadcast %0 : vector<32x1xf32> to vector<32x128xf32>
    %11 = vector.broadcast %9 : vector<1x128xf32> to vector<32x128xf32>
    %12 = arith.mulf %10, %11 : vector<32x128xf32>
    %13 = vector.broadcast %1 : vector<32x1xf32> to vector<32x128xf32>
    %14 = arith.addf %12, %13 : vector<32x128xf32>
    %cst = arith.constant 0.000000e+00 : f32
    %15 = vector.broadcast %cst : f32 to vector<32x128xf32>
    %16 = arith.maximumf %14, %15 : vector<32x128xf32>
    %cst_12 = arith.constant dense<0.000000e+00> : vector<16x128xf32>
    %17 = tpu.matmul %2, %16, %cst_12 {dimension_numbers = #tpu.dot_dimension_numbers<[1], [0], [0], [1], [0, 0, 1, 1], [], []>} : vector<16x32xf32>, vector<32x128xf32>, vector<16x128xf32> -> vector<16x128xf32>
    %18 = vector.broadcast %3 : vector<16x1xf32> to vector<16x128xf32>
    %19 = arith.addf %17, %18 : vector<16x128xf32>
    %cst_13 = arith.constant 0.000000e+00 : f32
    %20 = vector.broadcast %cst_13 : f32 to vector<16x128xf32>
    %21 = arith.maximumf %19, %20 : vector<16x128xf32>
    %cst_14 = arith.constant dense<0.000000e+00> : vector<1x128xf32>
    %22 = tpu.matmul %4, %21, %cst_14 {dimension_numbers = #tpu.dot_dimension_numbers<[1], [0], [0], [1], [0, 0, 1, 1], [], []>} : vector<1x16xf32>, vector<16x128xf32>, vector<1x128xf32> -> vector<1x128xf32>
    %23 = vector.broadcast %5 : vector<1x1xf32> to vector<1x128xf32>
    %24 = arith.addf %22, %23 : vector<1x128xf32>
    %c0_15 = arith.constant 0 : index
    %25 = arith.index_cast %7 : i32 to index
    %26 = vector.load %arg8[%c0_15, %25] : memref<1x256xf32, #tpu.memory_space<vmem>>, vector<1x128xf32>
    tpu.vector_store %arg8[%c0_15, %25], %24 {strides = array<i32>} : memref<1x256xf32, #tpu.memory_space<vmem>>, vector<1x128xf32>,
    %c1_i32 = arith.constant 1 : i32
    %c128_i32_16 = arith.constant 128 : i32
    %27 = arith.muli %c1_i32, %c128_i32_16 : i32
    %28 = tpu.assume_multiple %27, 128 : i32
    %c0_17 = arith.constant 0 : index
    %29 = arith.index_cast %28 : i32 to index
    %30 = vector.load %arg1[%c0_17, %29] : memref<1x256xf32, #tpu.memory_space<vmem>>, vector<1x128xf32>
    %31 = vector.broadcast %0 : vector<32x1xf32> to vector<32x128xf32>
    %32 = vector.broadcast %30 : vector<1x128xf32> to vector<32x128xf32>
    %33 = arith.mulf %31, %32 : vector<32x128xf32>
    %34 = vector.broadcast %1 : vector<32x1xf32> to vector<32x128xf32>
    %35 = arith.addf %33, %34 : vector<32x128xf32>
    %cst_18 = arith.constant 0.000000e+00 : f32
    %36 = vector.broadcast %cst_18 : f32 to vector<32x128xf32>
    %37 = arith.maximumf %35, %36 : vector<32x128xf32>
    %cst_19 = arith.constant dense<0.000000e+00> : vector<16x128xf32>
    %38 = tpu.matmul %2, %37, %cst_19 {dimension_numbers = #tpu.dot_dimension_numbers<[1], [0], [0], [1], [0, 0, 1, 1], [], []>} : vector<16x32xf32>, vector<32x128xf32>, vector<16x128xf32> -> vector<16x128xf32>
    %39 = vector.broadcast %3 : vector<16x1xf32> to vector<16x128xf32>
    %40 = arith.addf %38, %39 : vector<16x128xf32>
    %cst_20 = arith.constant 0.000000e+00 : f32
    %41 = vector.broadcast %cst_20 : f32 to vector<16x128xf32>
    %42 = arith.maximumf %40, %41 : vector<16x128xf32>
    %cst_21 = arith.constant dense<0.000000e+00> : vector<1x128xf32>
    %43 = tpu.matmul %4, %42, %cst_21 {dimension_numbers = #tpu.dot_dimension_numbers<[1], [0], [0], [1], [0, 0, 1, 1], [], []>} : vector<1x16xf32>, vector<16x128xf32>, vector<1x128xf32> -> vector<1x128xf32>
    %44 = vector.broadcast %5 : vector<1x1xf32> to vector<1x128xf32>
    %45 = arith.addf %43, %44 : vector<1x128xf32>
    %c0_22 = arith.constant 0 : index
    %46 = arith.index_cast %28 : i32 to index
    %47 = vector.load %arg8[%c0_22, %46] : memref<1x256xf32, #tpu.memory_space<vmem>>, vector<1x128xf32>
    tpu.vector_store %arg8[%c0_22, %46], %45 {strides = array<i32>} : memref<1x256xf32, #tpu.memory_space<vmem>>, vector<1x128xf32>,
    %c2_i32 = arith.constant 2 : i32
    return
  }
  func.func @transform_0(%arg0: i32) -> (i32, i32) {
    %c0_i32 = arith.constant 0 : i32
    %c0_i32_0 = arith.constant 0 : i32
    return %c0_i32, %arg0 : i32, i32
  }
  func.func @transform_1(%arg0: i32) -> (i32, i32) {
    %c0_i32 = arith.constant 0 : i32
    %c0_i32_0 = arith.constant 0 : i32
    %c0_i32_1 = arith.constant 0 : i32
    return %c0_i32, %c0_i32_0 : i32, i32
  }
  func.func @transform_2(%arg0: i32) -> (i32, i32) {
    %c0_i32 = arith.constant 0 : i32
    %c0_i32_0 = arith.constant 0 : i32
    %c0_i32_1 = arith.constant 0 : i32
    return %c0_i32, %c0_i32_0 : i32, i32
  }
  func.func @transform_3(%arg0: i32) -> (i32, i32) {
    %c0_i32 = arith.constant 0 : i32
    %c0_i32_0 = arith.constant 0 : i32
    %c0_i32_1 = arith.constant 0 : i32
    return %c0_i32, %c0_i32_0 : i32, i32
  }
  func.func @transform_4(%arg0: i32) -> (i32, i32) {
    %c0_i32 = arith.constant 0 : i32
    %c0_i32_0 = arith.constant 0 : i32
    %c0_i32_1 = arith.constant 0 : i32
    return %c0_i32, %c0_i32_0 : i32, i32
  }
  func.func @transform_5(%arg0: i32) -> (i32, i32) {
    %c0_i32 = arith.constant 0 : i32
    %c0_i32_0 = arith.constant 0 : i32
    %c0_i32_1 = arith.constant 0 : i32
    return %c0_i32, %c0_i32_0 : i32, i32
  }
  func.func @transform_6(%arg0: i32) -> (i32, i32) {
    %c0_i32 = arith.constant 0 : i32
    %c0_i32_0 = arith.constant 0 : i32
    %c0_i32_1 = arith.constant 0 : i32
    return %c0_i32, %c0_i32_0 : i32, i32
  }
  func.func @transform_7(%arg0: i32) -> (i32, i32) {
    %c0_i32 = arith.constant 0 : i32
    %c0_i32_0 = arith.constant 0 : i32
    return %c0_i32, %arg0 : i32, i32
  }
}

</mosaic_0001>

<bundles_post_ra>
// kernel: tpu_custom_call.1
= control target key start
LH: loop header
LB: loop body
LE: loop exit
PB: predicated region body
PF: predicated region fallthrough
CT: control target
= control target key end

     0   :  { %s1227_s0 = inlined_call_operand.vmem [shape: f32[1,300], index: 0, kind: input, shape index: {}]   ;;  %s1228_s1 = inlined_call_operand.vmem [shape: f32[32,1], index: 1, kind: input, shape index: {}]   ;;  %s1229_s2 = inlined_call_operand.vmem [shape: f32[32,1], index: 2, kind: input, shape index: {}]   ;;  %s1230_s3 = inlined_call_operand.vmem [shape: f32[16,32], index: 3, kind: input, shape index: {}]   ;;  %s1231_s4 = inlined_call_operand.vmem [shape: f32[16,1], index: 4, kind: input, shape index: {}]   ;;  %s1232_s5 = inlined_call_operand.vmem [shape: f32[1,16], index: 5, kind: input, shape index: {}]   ;;  %s1233_s6 = inlined_call_operand.<no memory space> [shape: f32[1,1], index: 6, kind: input, shape index: {}]   ;;  %s1234_s7 = inlined_call_operand.hbm [shape: f32[1,300], index: 7, kind: output, shape index: {}]  }
   0x1   :  { %v12_v0 = vstv %s1233_s6 }
   0x2   :  { %13 = vst [vmem:[#allocation2] sm:$0x1] %v12_v0 }
   0x3   :  { %14 = vsyncpa [#allocation4], 0 }
   0x4   :  { %16 = vsyncpa [#allocation4 + $0x1], 0  ;;  %s1059_s26 = smov 0   ;;  %s1061_s27 = smov 0  }
   0x5   :  { %s1063_s28 = smov 0   ;;  %s1065_s29 = smov 0  }
   0x6 LB: > { %s1080_s6 = sadd.s32 4294967295, %s1009_s29   ;;  %s803_s30 = sadd.s32 4294967294, %s1009_s29   ;;  %s1009_s29 = sphi %s1065_s29, %s1242_s29   ;;  %s1005_s28 = sphi %s1063_s28, %s1241_s28   ;;  %s1001_s27 = sphi %s1061_s27, %s1240_s27   ;;  %s997_s26 = sphi %s1059_s26, %s1239_s26  }
   0x7   : > { %s1084_s8 = sadd.s32 1, %s1009_s29   ;;  %s181_s9 = sadd.s32 1, %s1005_s28 }
   0x8   : > { %s178_s10 = ssub.s32 %s1009_s29, %s1084_s8  ;;  %p191_p0 = scmp.ne.s32.totalorder %s1005_s28, %s1001_s27 }
   0x9   : > { %p179_p1 = scmp.eq.s32.totalorder %s178_s10, 0  ;;  %p192_p2 = scmp.eq.s32.totalorder %s1080_s6, 1 }
   0xa   : > { %p197_p3 = scmp.ne.s32.totalorder %s1001_s27, %s997_s26  ;;  %p198_p4 = scmp.eq.s32.totalorder %s803_s30, 1 }
   0xb   : > { %s1095_s11 = scalar_select %p179_p1, %s1005_s28, %s181_s9  }
   0xc   : > { %p1097_p5 = por %p192_p2, %p191_p0  ;;  %p1101_p6 = por %p198_p4, %p197_p3 }
   0xd   : > { %p806_p7 = scmp.ge.s32.totalorder %s1009_s29, 1  ;;  %p250_p8 = scmp.lt.s32.totalorder %s1009_s29, 3 }
   0xf   : > { %p251_p9 = pnand %p806_p7, %p250_p8 }
  0x10   : > { %v307_v1 = vld [vmem:[%s1229_s2] sm:$0xff] (!%p251_p9)  ;;  %v1011_v3 = vmov (!%p251_p9), 0   ;;  %v308_v4 = vld [vmem:[%s1229_s2 + $0x8] sm:$0xff] (!%p251_p9)  ;;  %v306_v6 = vld [vmem:[%s1228_s1 + $0x18] sm:$0xff] (!%p251_p9)  ;;  %vm386_vm0 = vcmask (!%p251_p9), 261120   ;;  %s1145_s21 = sshll.u32 (!%p251_p9), %s1080_s6, 1 }
  0x11   : > { %254 = sbr.rel (%p251_p9) target bundleno = 862 (0x35e), region = 48  ;;  %v303_v2 = vld [vmem:[%s1228_s1] sm:$0xff] (!%p251_p9)  ;;  %946 = vset.pattern.permute.xlu1 (!%p251_p9), %v1011_v3  ;;  %945 = vset.pattern.permute.xlu0 (!%p251_p9), %v1011_v3  ;;  %v304_v5 = vld [vmem:[%s1228_s1 + $0x8] sm:$0xff] (!%p251_p9)  ;;  %v305_v7 = vld [vmem:[%s1228_s1 + $0x10] sm:$0xff] (!%p251_p9)  ;;  %p290_p10 = scmp.lt.s32.totalorder (!%p251_p9), %s1145_s21, 2  ;;  %v1012_v53 = vmov (!%p251_p9), 0.0|0.0  }
  0x12   : > { %350 = vperm.xlu1 (!%p251_p9), %946, %v307_v1   ;;  %320 = vperm.xlu0 (!%p251_p9), %945, %v303_v2   ;;  %v310_v8 = vld [vmem:[%s1229_s2 + $0x18] sm:$0xff] (!%p251_p9)  ;;  %v309_v9 = vld [vmem:[%s1229_s2 + $0x10] sm:$0xff] (!%p251_p9)  ;;  %v314_v10 = vld [vmem:[%s1231_s4 + $0x8] sm:$0xff] (!%p251_p9)  ;;  %vm1013_vm1 = vmmov (!%p251_p9), 0   ;;  %v1014_v54 = vmov (!%p251_p9), 0.0   ;;  %vm479_vm2 = vcmask (!%p251_p9), 130048   ;;  %v475_v1 = vlaneseq (!%p251_p9) }
  0x13   : > { %v313_v11 = vld [vmem:[%s1231_s4] sm:$0xff] (!%p251_p9)  ;;  %v312_v52 = vld [vmem:[%s1230_s3 + $0x8] sm:$0xff] (!%p251_p9)  ;;  %889 = vmatprep.subr.bf16.mxu1 (!%p251_p9), %v1012_v53  ;;  %860 = vmatprep.mubr.msk.f32.mxu1 (!%p251_p9), %vm1013_vm1, %v1014_v54  ;;  %s282_s15 = sand.u32 (!%p251_p9), 1, %s1001_s27  }
  0x14   : > { %v316_v12 = vld [vmem:[#allocation2] sm:$0x1] (!%p251_p9)  ;;  %v476_v2 = vshrl.u32 (!%p251_p9), %v475_v1, 7  ;;  %s807_s16 = sshll.u32 (!%p251_p9), %s282_s15, 1  ;;  %vm1164_vm3 = vcmp.lt.s32.totalorder (!%p251_p9), %v475_v1, 128  ;;  %s1173_s18 = scalar_lea.sflag (!%p251_p9), [#allocation4], %s282_s15 }
  0x15   : > { %v1140_v13 = vld [vmem:[%s1230_s3] sm:$0xff] (!%p251_p9)  ;;  %s284_s17 = scalar_lea.vmem (!%p251_p9), [#allocation3], %s807_s16 }
  0x16   : > { %355 = vperm.xlu1 (!%p251_p9), %946, %v308_v4   ;;  %325 = vperm.xlu0 (!%p251_p9), %945, %v304_v5   ;;  %v315_v0 = vld [vmem:[%s1232_s5] sm:$0x1] (!%p251_p9)  ;;  %v477_v3 = vsub.s32 (!%p251_p9), 0, %v476_v2 }
  0x17   : > { %853 = vmatprep.mubr.msk.f32.mxu0 (!%p251_p9), %vm386_vm0, %v1140_v13 }
  0x18   : > { %s291_s22 = scalar_select %p290_p10, %s1145_s21, 2 }
  0x19   : > { %s736_s19 = ssub.s32 (%p1097_p5), 3, %s1145_s21 }
  0x1a   : > { %335 = vperm.xlu1 %946, %v306_v6   ;;  %330 = vperm.xlu0 %945, %v305_v7   ;;  %s292_s25 = scalar_lea.vmem %s1227_s0, %s291_s22  ;;  %p737_p11 = scmp.lt.s32.totalorder (%p1097_p5), %s736_s19, 2 }
  0x1b   : > { %v814_v14 = vld [vmem:[%s292_s25 + $0x1] ss:$0 sm:$0xff]  ;;  %v809_v15 = vld [vmem:[%s292_s25] ss:$0 sm:$0xff] }
  0x1e   : > { %365 = vperm.xlu1 %946, %v310_v8   ;;  %360 = vperm.xlu0 %945, %v309_v9  }
  0x22   : > { %383 = vperm.xlu1 %946, %v314_v10   ;;  %378 = vperm.xlu0 %945, %v313_v11  }
  0x26   : > { %472 = vperm.xlu0 %945, %v316_v12  }
  0x91   : > { %v351_v16 = vpop.permute.xlu1 %350  ;;  %v321_v17 = vpop.permute.xlu0 %320 }
  0x92   : > { %v566_v18 = vmul.f32 %v814_v14, %v321_v17  ;;  %v344_v19 = vmul.f32 %v809_v15, %v321_v17 }
  0x94   : > { %v570_v20 = vadd.f32 %v566_v18, %v351_v16  ;;  %v368_v25 = vadd.f32 %v351_v16, %v344_v19 }
  0x95   : > { %v356_v21 = vpop.permute.xlu1 %355  ;;  %v326_v22 = vpop.permute.xlu0 %325 }
  0x96   : > { %v345_v23 = vmul.f32 %v809_v15, %v326_v22  ;;  %v567_v24 = vmul.f32 %v814_v14, %v326_v22  ;;  %v574_v30 = vmax.f32 %v570_v20, 0.0  ;;  %v372_v34 = vmax.f32 %v368_v25, 0.0 }
  0x98   : > { %v369_v26 = vadd.f32 %v356_v21, %v345_v23  ;;  %v571_v27 = vadd.f32 %v567_v24, %v356_v21 }
  0x99   : > { %v336_v28 = vpop.permute.xlu1 %335  ;;  %v331_v29 = vpop.permute.xlu0 %330 }
  0x9a   : > { %v575_v31 = vmax.f32 %v571_v27, 0.0  ;;  %v569_v32 = vmul.f32 %v814_v14, %v336_v28  ;;  %v568_v33 = vmul.f32 %v814_v14, %v331_v29  ;;  %v373_v35 = vmax.f32 %v369_v26, 0.0 }
  0x9b   : > { %v347_v36 = vmul.f32 %v809_v15, %v336_v28  ;;  %v346_v37 = vmul.f32 %v809_v15, %v331_v29 }
  0x9c   : > { %v892_v38 = vpack.c.bf16 %v575_v31, %v574_v30  ;;  %v881_v41 = vpack.c.bf16 %v373_v35, %v372_v34 }
  0x9d   : > { %v366_v39 = vpop.permute.xlu1 %365  ;;  %v361_v40 = vpop.permute.xlu0 %360 }
  0x9e   : > { %v371_v42 = vadd.f32 %v366_v39, %v347_v36  ;;  %v573_v43 = vadd.f32 %v569_v32, %v366_v39  ;;  %v370_v44 = vadd.f32 %v361_v40, %v346_v37  ;;  %v572_v45 = vadd.f32 %v568_v33, %v361_v40  ;;  %882 = vmatprep.subr.bf16.mxu0 %v881_v41 }
  0x9f   : > { %884 = vmatpush3.bf16.msra.mxu0 %v881_v41 }
  0xa0   : > { %v375_v46 = vmax.f32 %v371_v42, 0.0  ;;  %v577_v47 = vmax.f32 %v573_v43, 0.0  ;;  %v374_v48 = vmax.f32 %v370_v44, 0.0  ;;  %v576_v49 = vmax.f32 %v572_v45, 0.0 }
  0xa1   : > { %v384_v55 = vpop.permute.xlu1 %383  ;;  %v379_v57 = vpop.permute.xlu0 %378 }
  0xa2   : > { %v885_v50 = vpack.c.bf16 %v375_v46, %v374_v48  ;;  %v896_v51 = vpack.c.bf16 %v577_v47, %v576_v49 }
  0xa4   : > { %886 = vmatprep.subr.bf16.mxu0 %v885_v50 }
  0xa5   : > { %888 = vmatpush3.bf16.msra.mxu0 %v885_v50  ;;  %v473_v4 = vpop.permute.xlu0 %472 }
  0xa6   : > { %900 = vmatprep.subr.bf16.mxu0 %v1012_v53  ;;  %v478_v5 = vrot.slane %v473_v4, %v477_v3 }
  0xa8   : > { %854 = vmatmul.mubr.msk.f32.vlgmr.msra.gmra.mrb[0].mxu0 %vm386_vm0, %v312_v52 }
  0xa9   : > { %878 = vmatprep.mubr.msk.f32.mxu0 %vm1013_vm1, %v1014_v54 }
 0x17b   : > { %v855_v56 = vpop.f32.mrb[0].mxu0 }
 0x17c   : > { %v465_v58 = vadd.f32 %v855_v56, %v384_v55  ;;  %v459_v59 = vpop.f32.mrb[1].mxu0 }
 0x17d   : > { %v460_v60 = vadd.f32 %v459_v59, %v379_v57 }
 0x17e   : > { %v469_v61 = vmax.f32 %v465_v58, 0.0 }
 0x17f   : > { %v468_v62 = vmax.f32 %v460_v60, 0.0 }
 0x181   : > { %v890_v63 = vpack.c.bf16 %v469_v61, %v468_v62 }
 0x183   : > { %891 = vmatpush3.bf16.msra.mxu1 %v890_v63 }
 0x184   : > { %893 = vmatprep.subr.bf16.mxu1 %v892_v38 }
 0x186   : > { %861 = vmatmul.mubr.msk.f32.vlgmr.msra.gmra.mrb[0].mxu1 %vm479_vm2, %v315_v0 }
 0x187   : > { %895 = vmatpush3.bf16.msra.mxu1 %v892_v38  ;;  %871 = vmatprep.mubr.msk.f32.mxu1 %vm386_vm0, %v1140_v13 }
 0x188   : > { %897 = vmatprep.subr.bf16.mxu1 %v896_v51 }
 0x18b   : > { %899 = vmatpush3.bf16.msra.mxu1 %v896_v51 }
 0x18e   : > { %872 = vmatmul.mubr.msk.f32.vlgmr.msra.gmra.mrb[2].mxu1 %vm386_vm0, %v312_v52 }
 0x259   : > { %v549_v7 = vpop.f32.mrb[0].mxu1 }
 0x25a   : > { %v550_v8 = vadd.f32 %v549_v7, %v478_v5  ;;  %v862_v9 = vpop.f32.mrb[1].mxu1 }
 0x25c   : > { %557 = vst.msk [vmem:[%s284_s17] sm:$0x1] %vm1164_vm3, %v550_v8 }
 0x261   : > { %v873_v10 = vpop.f32.mrb[2].mxu1 }
 0x262   : > { %v650_v11 = vadd.f32 %v873_v10, %v384_v55  ;;  %v644_v12 = vpop.f32.mrb[3].mxu1 }
 0x263   : > { %v645_v13 = vadd.f32 %v644_v12, %v379_v57 }
 0x264   : > { %v654_v14 = vmax.f32 %v650_v11, 0.0 }
 0x265   : > { %v653_v15 = vmax.f32 %v645_v13, 0.0 }
 0x267   : > { %v901_v16 = vpack.c.bf16 %v654_v14, %v653_v15 }
 0x269   : > { %902 = vmatpush3.bf16.msra.mxu0 %v901_v16 }
 0x26c   : > { %879 = vmatmul.mubr.msk.f32.vlgmr.msra.gmra.mrb[2].mxu0 %vm479_vm2, %v315_v0 }
 0x33c   : > { %734 = sbr.rel (!%p1097_p5) target bundleno = 862 (0x35e), region = 52 }
 0x33f   : > { %v721_v17 = vpop.f32.mrb[2].mxu0 }
 0x340   : > { %v722_v18 = vadd.f32 %v721_v17, %v478_v5  ;;  %v880_v19 = vpop.f32.mrb[3].mxu0 }
 0x342   : > { %818 = vst.msk [vmem:[%s284_s17 + $0x1] sm:$0x1] %vm1164_vm3, %v722_v18 }
 0x343   : > { %s1244_s19 = smov (!%p737_p11, %s736_s19), 2 }
 0x344   : > { %s1178_s20 = sshll.u32 %s1244_s19, 4 }
 0x345   : > { %s741_s22 = ssub.s32 32, %s1178_s20 }
 0x346   : > { %742 = vsyncadd %s1173_s18, %s741_s22  ;;  %p822_p12 = scmp.ne.s32.totalorder %s1178_s20, 0  ;;  %s826_s23 = sshll.u32 %s1080_s6, 5 }
 0x347   : > { %s1187_s12 = scalar_lea.hbm %s1234_s7, %s826_s23  ;;  %s747_s30 = sshll.u32 %s284_s17, 4  ;;  %s748_s30 = int_to_ptr.vmem [resolvable:$true] %s747_s30 }
 0x348   : > { %s947_s21 = scalar_lea.vmem %s748_s30, %s1178_s20  ;;  %s1015_s9 = smov [#allocation3]  }
 0x349   : > { %p948_p13 = scmp.ne.s32.totalorder %s748_s30, %s947_s21  ;;  %s951_s10 = sshll.u32 %s1015_s9, 4  ;;  %s952_s10 = int_to_ptr.vmem [resolvable:$false] %s951_s10 }
 0x34a   : > { %s953_s14 = scalar_lea.vmem %s952_s10, 64  ;;  %p954_p2 = scmp.lt.s32.totalorder %s748_s30, %s952_s10 }
 0x34b   : > { %p949_p0 = pnand %p948_p13, %p822_p12  ;;  %p955_p3 = scmp.lt.s32.totalorder %s953_s14, %s947_s21 }
 0x34d   : > { %p950_p1 = pneg %p949_p0  ;;  %p956_p4 = por %p955_p3, %p954_p2 }
 0x34f   : > { %p957_p5 = pnand %p956_p4, %p950_p1 }
 0x351   : > { %960 = shalt.err (!%p957_p5)
}
 0x352   : > { %s961_s6 = scalar_lea.hbm %s1187_s12, %s1178_s20  ;;  %s965_s17 = scalar_lea.hbm %s1234_s7, 48 }
 0x353   : > { %p962_p7 = scmp.ne.s32.totalorder %s1187_s12, %s961_s6  ;;  %p966_p10 = scmp.lt.u32.totalorder %s1187_s12, %s1234_s7 }
 0x354   : > { %p967_p11 = scmp.lt.u32.totalorder %s965_s17, %s961_s6  ;;  %p969_p0 = scmp.lt.u32.totalorder %s961_s6, %s1187_s12 }
 0x355   : > { %p963_p8 = pnand %p962_p7, %p822_p12 }
 0x356   : > { %p968_p13 = por %p967_p11, %p966_p10 }
 0x357   : > { %p964_p9 = pneg %p963_p8 }
 0x358   : > { %p970_p1 = por %p969_p0, %p968_p13 }
 0x35a   : > { %p971_p2 = pnand %p970_p1, %p964_p9 }
 0x35c   : > { %974 = shalt.err (!%p971_p2)
}
 0x35d   : > { %750 = dma.vmem_to_hbm [thread:$0]  (%p822_p12), %s748_s30, %s1178_s20, %s1187_s12, %s1173_s18  }
 0x35e PF: > { %p908_p3 = scmp.ge.s32.totalorder %s1009_s29, 2  ;;  %s759_s23 = sand.u32 1, %s997_s26  }
 0x35f   : > { %s760_s24 = scalar_lea.sflag [#allocation4], %s759_s23 }
 0x360   : > { %p905_p4 = pnand %p908_p3, %p1101_p6 }
 0x362   : > { %992 = dma.done.wait (!%p905_p4), %s760_s24, 32  }
 0x363   : > { %994 = vsyncadd (!%p905_p4), %s760_s24, 4294967264  ;;  %p19_p5 = scmp.ge.s32.totalorder %s1084_s8, 4   ;;  %s1239_s26 = smov %s1001_s27 }
 0x364   : > { %s1240_s27 = smov %s1005_s28  ;;  %s1241_s28 = smov %s1095_s11 }
 0x365   : > { %s1242_s29 = smov %s1084_s8  ;;  %21 = sbr.rel (!%p19_p5) target bundleno = 6 (0x6), region = 85 }
 0x36c   :  { %765 = vsyncpa [#allocation4], 1 }
 0x36d   :  { %767 = vsyncpa [#allocation4 + $0x1], 1 }

</bundles_post_ra>
